<compile_context>
chip_gen: v6e
topology: v6e:2x2x1
jax: 0.10.0
libtpu: 0.0.40
codegen_flags: <defaults>
</compile_context>

<pallas_src>
import math

import jax
import jax.numpy as jnp
from jax.experimental import pallas as pl
from jax.experimental.pallas import tpu as pltpu


def make_pe_table(d_model, max_len=5000, dtype=jnp.float32):
    """Deterministic sinusoidal positional-encoding table (max_len, d_model)."""
    position = jnp.arange(max_len, dtype=jnp.float32)[:, None]            # (L, 1)
    div_term = jnp.exp(
        jnp.arange(0, d_model, 2, dtype=jnp.float32) * (-math.log(10000.0) / d_model)
    )                                                                      # (D/2,)
    ang = position * div_term                                              # (L, D/2)
    pe = jnp.zeros((max_len, d_model), dtype=jnp.float32)
    pe = pe.at[:, 0::2].set(jnp.sin(ang))
    pe = pe.at[:, 1::2].set(jnp.cos(ang))
    return pe.astype(dtype)


# ----------------------------- dropout hash --------------------------------

def _as_i32(u):
    """Reinterpret an unsigned 32-bit constant as a signed int32 Python int."""
    return u - (1 << 32) if u >= (1 << 31) else u


def _lsr(h, k):
    """Logical right shift for int32 (jnp >> is arithmetic on signed ints)."""
    return (h >> k) & jnp.int32((1 << (32 - k)) - 1)


def _keep_mask(shape, row0, col0, row_stride, seed, thresh_i32):
    """Boolean keep-mask: murmur3-fmix32 hash of the global element index.

    keep <=> uint32(hash) >= round(p * 2^32); implemented with a sign-bit flip
    so only signed int32 ops are needed (portable to Mosaic + interpret mode).
    """
    r = jax.lax.broadcasted_iota(jnp.int32, shape, 0)
    c = jax.lax.broadcasted_iota(jnp.int32, shape, 1)
    h = (row0 + r) * jnp.int32(row_stride) + (col0 + c)
    h = h + seed * jnp.int32(_as_i32(0x9E3779B1))
    h = h ^ _lsr(h, 16)
    h = h * jnp.int32(_as_i32(0x85EBCA6B))
    h = h ^ _lsr(h, 13)
    h = h * jnp.int32(_as_i32(0xC2B2AE35))
    h = h ^ _lsr(h, 16)
    h = h ^ jnp.int32(-(2 ** 31))          # unsigned order -> signed order
    return h >= jnp.int32(thresh_i32)


# ------------------------------- kernels ------------------------------------

def _pe_add_kernel(x_ref, pe_ref, o_ref):
    # Column-blocked path (d_model % 128 == 0): x/pe blocks are both (ts, D).
    o_ref[...] = x_ref[...] + pe_ref[...]


def _make_pe_add_widen_kernel(batch):
    # Full-width fallback path: widen pe (ts, D) -> (ts, B*D) by lane concat.
    def kernel(x_ref, pe_ref, o_ref):
        pe = pe_ref[...]
        if batch > 1:
            pe = jnp.concatenate([pe] * batch, axis=-1)
        o_ref[...] = x_ref[...] + pe
    return kernel


def _make_dropout_kernel_col(ts, d, row_stride, thresh_i32, keep_scale):
    def kernel(seed_ref, x_ref, pe_ref, o_ref):
        y = x_ref[...] + pe_ref[...]
        row0 = pl.program_id(0) * ts
        col0 = pl.program_id(1) * d
        keep = _keep_mask(y.shape, row0, col0, row_stride, seed_ref[0], thresh_i32)
        o_ref[...] = jnp.where(keep, y * keep_scale, jnp.zeros_like(y))
    return kernel


def _make_dropout_kernel_full(ts, batch, row_stride, thresh_i32, keep_scale):
    def kernel(seed_ref, x_ref, pe_ref, o_ref):
        pe = pe_ref[...]
        if batch > 1:
            pe = jnp.concatenate([pe] * batch, axis=-1)
        y = x_ref[...] + pe
        row0 = pl.program_id(0) * ts
        keep = _keep_mask(y.shape, row0, 0, row_stride, seed_ref[0], thresh_i32)
        o_ref[...] = jnp.where(keep, y * keep_scale, jnp.zeros_like(y))
    return kernel


# ------------------------------- wrapper -------------------------------------

def _pick_seq_tile(seq_len, block_row_bytes, target_bytes=4 << 20):
    """Rows per block: ~target_bytes per x block; multiple of 8 when tiling."""
    if seq_len <= 8:
        return seq_len
    padded = ((seq_len + 7) // 8) * 8
    rows = (target_bytes // max(block_row_bytes, 1)) // 8 * 8
    rows = max(8, min(rows, padded))
    # Keep >= 2 row tiles when there is enough work (helps v7x's 2-TC split).
    if rows >= padded and padded >= 16:
        rows = max(8, ((padded // 2 + 7) // 8) * 8)
    return int(rows)


def positional_encoding(x, pe_table, *, dropout_p=0.1, training=False, seed=0):
    """Forward pass of PositionalEncoding. x: (S, B, D); pe_table: (max_len, D)."""
    S, B, D = x.shape
    if pe_table.shape[0] < S:
        raise ValueError("pe_table shorter than sequence length")

    if training and dropout_p >= 1.0:
        return jnp.zeros_like(x)                      # torch: p=1 drops everything

    x2 = x.reshape(S, B * D)                          # lane-dense 2-D view (free)
    use_cols = (D % 128 == 0)                         # per-(i, b) (ts, D) blocks
    block_w = D if use_cols else B * D
    ts = _pick_seq_tile(S, block_w * x.dtype.itemsize)
    st = pl.cdiv(S, ts)
    grid = (st, B) if use_cols else (st,)

    # pe's block needs its row dim (ts) to be a multiple of 8 or the full array
    # dim; pre-cast to x.dtype once (no per-tile cast, half the stream for bf16).
    pe_src = pe_table if ts % 8 == 0 else pe_table[:S]
    if pe_src.dtype != x.dtype:
        pe_src = pe_src.astype(x.dtype)

    compiler_params = pltpu.CompilerParams(
        dimension_semantics=("parallel", "arbitrary") if use_cols else ("parallel",),
        vmem_limit_bytes=40 * 1024 * 1024,            # safe on v5e/v6e/v7x
    )
    out_shape = jax.ShapeDtypeStruct((S, B * D), x.dtype)

    if (not training) or dropout_p <= 0.0:
        if use_cols:
            x_spec = pl.BlockSpec((ts, D), lambda i, b: (i, b))
            pe_spec = pl.BlockSpec((ts, D), lambda i, b: (i, 0))
            kern = _pe_add_kernel
        else:
            x_spec = pl.BlockSpec((ts, B * D), lambda i: (i, 0))
            pe_spec = pl.BlockSpec((ts, D), lambda i: (i, 0))
            kern = _make_pe_add_widen_kernel(B)
        out2 = pl.pallas_call(
            kern,
            out_shape=out_shape,
            grid_spec=pltpu.PrefetchScalarGridSpec(
                num_scalar_prefetch=0,
                grid=grid,
                in_specs=[x_spec, pe_spec],
                out_specs=x_spec,
            ),
            compiler_params=compiler_params,
        )(x2, pe_src)
        return out2.reshape(S, B, D)

    # Training: PE add + inverted dropout fused in-kernel (hash-based mask).
    keep_scale = 1.0 / (1.0 - dropout_p)
    thresh_u = min(int(round(dropout_p * (2 ** 32))), 2 ** 32 - 1)
    thresh_i32 = thresh_u - 2 ** 31                   # signed-compare threshold

    seed_arr = jnp.asarray([seed], dtype=jnp.int32)
    if use_cols:
        x_spec = pl.BlockSpec((ts, D), lambda i, b, s: (i, b))
        pe_spec = pl.BlockSpec((ts, D), lambda i, b, s: (i, 0))
        kern = _make_dropout_kernel_col(ts, D, B * D, thresh_i32, keep_scale)
    else:
        x_spec = pl.BlockSpec((ts, B * D), lambda i, s: (i, 0))
        pe_spec = pl.BlockSpec((ts, D), lambda i, s: (i, 0))
        kern = _make_dropout_kernel_full(ts, B, B * D, thresh_i32, keep_scale)

    out2 = pl.pallas_call(
        kern,
        out_shape=out_shape,
        grid_spec=pltpu.PrefetchScalarGridSpec(
            num_scalar_prefetch=1,
            grid=grid,
            in_specs=[x_spec, pe_spec],
            out_specs=x_spec,
        ),
        compiler_params=compiler_params,
    )(seed_arr, x2, pe_src)
    return out2.reshape(S, B, D)


# --------------------------------- tests -------------------------------------

if __name__ == "__main__":
    key = jax.random.PRNGKey(0)

    def check(S, B, D, max_len, p=0.1, seed=1234):
        kx = jax.random.fold_in(key, S * 1000 + D)
        x = jax.random.normal(kx, (S, B, D), dtype=jnp.float32)
        pe_table = make_pe_table(D, max_len=max_len)
        ref = x + pe_table[:S][:, None, :]

        # Eval mode: dropout is identity -> must match reference exactly.
        out_eval = jax.block_until_ready(
            positional_encoding(x, pe_table, dropout_p=p, training=False))
        assert out_eval.shape == (S, B, D)
        assert jnp.allclose(out_eval, ref, atol=1e-6), "eval-mode mismatch"

        # Training mode: fused inverted dropout.
        out_train = jax.block_until_ready(
            positional_encoding(x, pe_table, dropout_p=p, training=True, seed=seed))
        assert out_train.shape == (S, B, D)
        kept = out_train != 0
        assert jnp.allclose(jnp.where(kept, out_train, 0.0),
                            jnp.where(kept, ref / (1.0 - p), 0.0), atol=1e-5)
        drop_frac = float(1.0 - jnp.mean(kept.astype(jnp.float32)))
        assert 0.02 <= drop_frac <= 0.30, f"implausible dropout rate {drop_frac}"

    # d_model not a multiple of 128 -> lane-dense full-width (ts, B*D) path.
    check(S=8, B=2, D=32, max_len=64)
    # d_model multiple of 128 -> (S_tiles, B) grid with per-(i, b) (ts, D) blocks.
    check(S=16, B=2, D=128, max_len=64)

    print("KERNEL_OK")
</pallas_src>

<mosaic_0001>
module attributes {stable_mosaic.version = 11 : i64} {
  func.func @kernel(%arg0: i32, %arg1: memref<8x64xf32, #tpu.memory_space<vmem>>, %arg2: memref<8x32xf32, #tpu.memory_space<vmem>>, %arg3: memref<8x64xf32, #tpu.memory_space<vmem>>) attributes {dimension_semantics = [#tpu.dimension_semantics<parallel>], iteration_bounds = array<i64: 1>, scalar_prefetch = 0 : i64, scratch_operands = 0 : i64, tpu.core_type = #tpu.core_type<tc>, window_params = [{transform_indices = @transform_0, window_bounds = array<i64: 8, 64>}, {transform_indices = @transform_1, window_bounds = array<i64: 8, 32>}, {transform_indices = @transform_2, window_bounds = array<i64: 8, 64>}]} {
    %c0 = arith.constant 0 : index
    %c0_0 = arith.constant 0 : index
    %0 = vector.load %arg2[%c0, %c0_0] : memref<8x32xf32, #tpu.memory_space<vmem>>, vector<8x32xf32>
    %1 = tpu.concatenate %0, %0 in 1 : vector<8x32xf32>, vector<8x32xf32> -> vector<8x64xf32>
    %c0_1 = arith.constant 0 : index
    %c0_2 = arith.constant 0 : index
    %2 = vector.load %arg1[%c0_1, %c0_2] : memref<8x64xf32, #tpu.memory_space<vmem>>, vector<8x64xf32>
    %3 = arith.addf %2, %1 : vector<8x64xf32>
    %c0_3 = arith.constant 0 : index
    %c0_4 = arith.constant 0 : index
    %4 = vector.load %arg3[%c0_3, %c0_4] : memref<8x64xf32, #tpu.memory_space<vmem>>, vector<8x64xf32>
    tpu.vector_store %arg3[%c0_3, %c0_4], %3 {strides = array<i32>} : memref<8x64xf32, #tpu.memory_space<vmem>>, vector<8x64xf32>,
    return
  }
  func.func @transform_0(%arg0: i32) -> (i32, i32) {
    %c0_i32 = arith.constant 0 : i32
    %c0_i32_0 = arith.constant 0 : i32
    return %arg0, %c0_i32 : i32, i32
  }
  func.func @transform_1(%arg0: i32) -> (i32, i32) {
    %c0_i32 = arith.constant 0 : i32
    %c0_i32_0 = arith.constant 0 : i32
    return %arg0, %c0_i32 : i32, i32
  }
  func.func @transform_2(%arg0: i32) -> (i32, i32) {
    %c0_i32 = arith.constant 0 : i32
    %c0_i32_0 = arith.constant 0 : i32
    return %arg0, %c0_i32 : i32, i32
  }
}

</mosaic_0001>

<bundles_post_ra>
// kernel: tpu_custom_call.1
= control target key start
LH: loop header
LB: loop body
LE: loop exit
PB: predicated region body
PF: predicated region fallthrough
CT: control target
= control target key end

     0   :  { %s87_s0 = inlined_call_operand.vmem [shape: f32[8,64], index: 0, kind: input, shape index: {}]   ;;  %s88_s1 = inlined_call_operand.vmem [shape: f32[64,32], index: 1, kind: input, shape index: {}]   ;;  %s89_s2 = inlined_call_operand.hbm [shape: f32[8,64], index: 2, kind: output, shape index: {}]  }
   0x1   :  { %v12_v0 = vld [vmem:[%s88_s1] sm:$0xff] }
   0x2   :  { %7 = vsyncpa [#allocation3], 0  ;;  %s61_s11 = smov 32   ;;  %vm17_vm0 = vcmask 261120   ;;  %v19_v1 = vld [vmem:[%s87_s0] sm:$0xff]  ;;  %s62_s14 = smov [#allocation2]  }
   0x3   :  { %14 = vrot.lane.b32.xlu0 %v12_v0, %s61_s11  ;;  %s29_s15 = sshll.u32 %s62_s14, 4  ;;  %vm21_vm1 = vcmask 523264   ;;  %s30_s15 = int_to_ptr.vmem [resolvable:$true] %s29_s15 }
   0x4   :  { %s39_s16 = scalar_lea.vmem %s30_s15, 128  ;;  %p44_p1 = scmp.lt.s32.totalorder %s30_s15, %s30_s15 }
   0x5   :  { %p40_p0 = scmp.ne.s32.totalorder %s30_s15, %s39_s16  ;;  %p45_p2 = scmp.lt.s32.totalorder %s39_s16, %s39_s16 }
   0x7   :  { %p46_p3 = por %p45_p2, %p44_p1 }
   0x9   :  { %p47_p4 = pnand %p46_p3, %p40_p0 }
  0x75   :  { %v15_v2 = vpop.permute.xlu0 %14 }
  0x76   :  { %v18_v3 = vsel %vm17_vm0, %v12_v0, %v15_v2 }
  0x77   :  { %v20_v4 = vadd.f32 %v19_v1, %v18_v3 }
  0x79   :  { %22 = vst.msk [vmem:[#allocation2] sm:$0xff] %vm21_vm1, %v20_v4 }
  0x7a   :  { %50 = shalt.err (!%p47_p4)
}
  0x7b   :  { %32 = dma.vmem_to_hbm [thread:$0]  %s30_s15, 128, %s89_s2, [#allocation3]  }
  0x7c   :  { %59 = dma.done.wait [#allocation3], 128  }
  0x7d   :  { %60 = vsyncadd [#allocation3], 4294967168 }
  0x7e   :  { %36 = vsyncpa [#allocation3], 1 }

</bundles_post_ra>
